<compile_context>
chip_gen: v6e
topology: v6e:2x2x1
jax: 0.10.0
libtpu: 0.0.40
codegen_flags: <defaults>
</compile_context>

<pallas_src>
from functools import partial

import numpy as np
import jax
import jax.numpy as jnp
from jax import lax
from jax.experimental import pallas as pl
from jax.experimental.pallas import tpu as pltpu


# ---------------------------------------------------------------------------
# Helpers
# ---------------------------------------------------------------------------
def _round_up(x, m):
    return ((x + m - 1) // m) * m


def _pad2d(a, rows, cols):
    r, c = a.shape
    if r == rows and c == cols:
        return a
    return jnp.pad(a, ((0, rows - r), (0, cols - c)))


def _weight_tiles(N, K, tn, tk):
    # Clamp requested tiles to the (aligned) problem size, keep (8,128) alignment.
    tn = min(tn, _round_up(N, 128))
    tk = min(tk, _round_up(K, 128))
    return tn, tk, _round_up(N, tn), _round_up(K, tk)


def _batch_tile(B, tb):
    tb = min(tb, _round_up(B, 8))
    return tb, _round_up(B, tb)


def _prep_weight(w, rows, cols, dtype):
    # Cast (bf16 HBM streaming) and pad only when needed; no-op for packed params.
    if w.dtype != dtype:
        w = w.astype(dtype)
    return _pad2d(w, rows, cols)


_COMPILER_PARAMS = pltpu.CompilerParams(
    # Only the N axis is marked parallel: on v7x (2 TC/chip) this makes the two
    # cores stream disjoint halves of the weights instead of duplicating the
    # (bandwidth-dominant) weight stream.  No effect on single-TC v5e/v6e.
    dimension_semantics=("arbitrary", "parallel", "arbitrary"),
    # ~11-16 MiB actually used at default tiles; 48 MiB leaves headroom for
    # double-buffering while staying well inside v7x's 64 MiB/TC.
    vmem_limit_bytes=48 * 1024 * 1024,
)


# ---------------------------------------------------------------------------
# Kernels
# ---------------------------------------------------------------------------
def _noisy_linear_kernel(x_ref, wmu_ref, wsig_ref, eout_ref, ein_ref, b3_ref,
                         o_ref, acc_ref, *, compute_dtype):
    k = pl.program_id(2)

    @pl.when(k == 0)
    def _():
        acc_ref[...] = jnp.zeros_like(acc_ref)

    dot_dtype = jnp.float32 if compute_dtype is None else compute_dtype

    # Noise rebuild on the VPU, kept in f32 (v5e has no bf16 VALU).  Structured as
    # (sigma * eps_out) * eps_in + mu so no separate (tn, tk) outer-product
    # temporary is materialized.
    wmu = wmu_ref[...].astype(jnp.float32)
    wsig = wsig_ref[...].astype(jnp.float32)
    w = (wsig * eout_ref[...]) * ein_ref[...] + wmu          # (tn, tk) f32
    w = w.astype(dot_dtype)                                   # cast only at the MXU
    xt = x_ref[...].astype(dot_dtype)                         # (tb, tk)

    # Contract K of x with K of w directly (no transpose materialization).
    acc_ref[...] += lax.dot_general(
        xt, w,
        dimension_numbers=(((1,), (1,)), ((), ())),
        preferred_element_type=jnp.float32)

    @pl.when(k == pl.num_programs(2) - 1)
    def _():
        b3 = b3_ref[...]                               # (3, tn): [mu; sigma; eps]
        bias = b3[0:1, :] + b3[1:2, :] * b3[2:3, :]    # (1, tn)
        o_ref[...] = (acc_ref[...] + bias).astype(o_ref.dtype)


def _linear_kernel(x_ref, w_ref, b_ref, o_ref, acc_ref, *, compute_dtype):
    k = pl.program_id(2)

    @pl.when(k == 0)
    def _():
        acc_ref[...] = jnp.zeros_like(acc_ref)

    dot_dtype = jnp.float32 if compute_dtype is None else compute_dtype
    w = w_ref[...].astype(dot_dtype)
    xt = x_ref[...].astype(dot_dtype)

    acc_ref[...] += lax.dot_general(
        xt, w,
        dimension_numbers=(((1,), (1,)), ((), ())),
        preferred_element_type=jnp.float32)

    @pl.when(k == pl.num_programs(2) - 1)
    def _():
        o_ref[...] = (acc_ref[...] + b_ref[...]).astype(o_ref.dtype)


# ---------------------------------------------------------------------------
# Wrappers
# ---------------------------------------------------------------------------
def noisy_linear_forward(x, weight_mu, weight_sigma, epsilon_in, epsilon_out,
                         bias_mu, bias_sigma, bias_epsilon,
                         *, tb=512, tn=512, tk=1024,
                         compute_dtype=jnp.bfloat16):
    """Training-mode NoisyLinear forward.

    weight_epsilon = outer(epsilon_out, epsilon_in) is never materialized in HBM:
    it is passed factored and rebuilt per-tile inside the kernel.  Weights are
    streamed in `compute_dtype` (bf16 by default: half the HBM bytes, fast MXU
    path on all generations; f32 accumulation kept).  compute_dtype=None selects
    a pure-f32 path.  weight_mu / weight_sigma may be pre-padded + pre-cast via
    pack_noisy_linear_params() to avoid per-call wrapper conversions.
    """
    B, K = x.shape
    N = epsilon_out.shape[0]           # logical sizes (weights may be pre-padded)
    tn, tk, Np, Kp = _weight_tiles(N, K, tn, tk)
    tb, Bp = _batch_tile(B, tb)
    wdtype = jnp.float32 if compute_dtype is None else compute_dtype

    x_p = _pad2d(x, Bp, Kp)
    wmu_p = _prep_weight(weight_mu, Np, Kp, wdtype)
    wsig_p = _prep_weight(weight_sigma, Np, Kp, wdtype)
    eout_p = _pad2d(epsilon_out.reshape(N, 1).astype(jnp.float32), Np, 1)
    ein_p = _pad2d(epsilon_in.reshape(1, K).astype(jnp.float32), 1, Kp)
    b3_p = _pad2d(jnp.stack([bias_mu, bias_sigma, bias_epsilon],
                            axis=0).astype(jnp.float32), 3, Np)

    kernel = partial(_noisy_linear_kernel, compute_dtype=compute_dtype)
    out_p = pl.pallas_call(
        kernel,
        out_shape=jax.ShapeDtypeStruct((Bp, Np), x.dtype),
        grid_spec=pltpu.PrefetchScalarGridSpec(
            num_scalar_prefetch=0,
            grid=(Bp // tb, Np // tn, Kp // tk),
            in_specs=[
                pl.BlockSpec((tb, tk), lambda i, j, k: (i, k)),   # x
                pl.BlockSpec((tn, tk), lambda i, j, k: (j, k)),   # weight_mu
                pl.BlockSpec((tn, tk), lambda i, j, k: (j, k)),   # weight_sigma
                pl.BlockSpec((tn, 1), lambda i, j, k: (j, 0)),    # eps_out (N,1)
                pl.BlockSpec((1, tk), lambda i, j, k: (0, k)),    # eps_in  (1,K)
                pl.BlockSpec((3, tn), lambda i, j, k: (0, j)),    # stacked bias terms
            ],
            out_specs=pl.BlockSpec((tb, tn), lambda i, j, k: (i, j)),
            scratch_shapes=[pltpu.VMEM((tb, tn), jnp.float32)],
        ),
        compiler_params=_COMPILER_PARAMS,
    )(x_p, wmu_p, wsig_p, eout_p, ein_p, b3_p)
    if Bp == B and Np == N:
        return out_p
    return out_p[:B, :N]


def linear_forward(x, weight, bias, *, tb=512, tn=512, tk=1024,
                   compute_dtype=jnp.bfloat16):
    """Plain tiled linear y = x @ weight.T + bias (eval-mode NoisyLinear)."""
    B, K = x.shape
    N = bias.shape[0]                   # logical N (weight may be pre-padded)
    tn, tk, Np, Kp = _weight_tiles(N, K, tn, tk)
    tb, Bp = _batch_tile(B, tb)
    wdtype = jnp.float32 if compute_dtype is None else compute_dtype

    x_p = _pad2d(x, Bp, Kp)
    w_p = _prep_weight(weight, Np, Kp, wdtype)
    b_p = _pad2d(bias.reshape(1, N).astype(jnp.float32), 1, Np)

    kernel = partial(_linear_kernel, compute_dtype=compute_dtype)
    out_p = pl.pallas_call(
        kernel,
        out_shape=jax.ShapeDtypeStruct((Bp, Np), x.dtype),
        grid_spec=pltpu.PrefetchScalarGridSpec(
            num_scalar_prefetch=0,
            grid=(Bp // tb, Np // tn, Kp // tk),
            in_specs=[
                pl.BlockSpec((tb, tk), lambda i, j, k: (i, k)),
                pl.BlockSpec((tn, tk), lambda i, j, k: (j, k)),
                pl.BlockSpec((1, tn), lambda i, j, k: (0, j)),
            ],
            out_specs=pl.BlockSpec((tb, tn), lambda i, j, k: (i, j)),
            scratch_shapes=[pltpu.VMEM((tb, tn), jnp.float32)],
        ),
        compiler_params=_COMPILER_PARAMS,
    )(x_p, w_p, b_p)
    if Bp == B and Np == N:
        return out_p
    return out_p[:B, :N]


def pack_noisy_linear_params(params, *, tn=512, tk=1024,
                             compute_dtype=jnp.bfloat16):
    """One-time packing of the weight matrices: pad to tile multiples and cast to
    the HBM streaming dtype.  Repeated forwards then do no wrapper-side jnp.pad /
    astype full-weight pass (an extra read+write of the whole weight set)."""
    N, K = params["weight_mu"].shape
    tn, tk, Np, Kp = _weight_tiles(N, K, tn, tk)
    wdtype = jnp.float32 if compute_dtype is None else compute_dtype
    packed = dict(params)
    packed["weight_mu"] = _pad2d(params["weight_mu"].astype(wdtype), Np, Kp)
    packed["weight_sigma"] = _pad2d(params["weight_sigma"].astype(wdtype), Np, Kp)
    return packed


def noisy_linear_apply(params, x, training=True, **kw):
    if training:
        return noisy_linear_forward(
            x, params["weight_mu"], params["weight_sigma"],
            params["epsilon_in"], params["epsilon_out"],
            params["bias_mu"], params["bias_sigma"], params["bias_epsilon"], **kw)
    return linear_forward(x, params["weight_mu"], params["bias_mu"], **kw)


# ---------------------------------------------------------------------------
# Deterministic parameter construction (mirrors reset_parameters / reset_noise)
# ---------------------------------------------------------------------------
def scale_noise(key, size):
    noise = jax.random.normal(key, (size,), dtype=jnp.float32)
    return jnp.sign(noise) * jnp.sqrt(jnp.abs(noise))


def make_noisy_linear_params(key, in_features, out_features, std_init=0.5):
    k_wmu, k_bmu, k_ein, k_eout = jax.random.split(key, 4)
    mu_range = 1.0 / np.sqrt(in_features)

    weight_mu = jax.random.uniform(
        k_wmu, (out_features, in_features), jnp.float32, -mu_range, mu_range)
    weight_sigma = jnp.full((out_features, in_features),
                            std_init / np.sqrt(in_features), jnp.float32)
    bias_mu = jax.random.uniform(
        k_bmu, (out_features,), jnp.float32, -mu_range, mu_range)
    bias_sigma = jnp.full((out_features,),
                          std_init / np.sqrt(out_features), jnp.float32)

    epsilon_in = scale_noise(k_ein, in_features)    # factored weight noise
    epsilon_out = scale_noise(k_eout, out_features)
    bias_epsilon = epsilon_out                      # matches reset_noise()

    return dict(weight_mu=weight_mu, weight_sigma=weight_sigma,
                epsilon_in=epsilon_in, epsilon_out=epsilon_out,
                bias_mu=bias_mu, bias_sigma=bias_sigma,
                bias_epsilon=bias_epsilon)


# ---------------------------------------------------------------------------
# Main
# ---------------------------------------------------------------------------
if __name__ == "__main__":
    key = jax.random.PRNGKey(0)
    k_params, k_x = jax.random.split(key)

    batch, in_features, out_features = 8, 32, 16
    params = make_noisy_linear_params(k_params, in_features, out_features,
                                      std_init=0.5)
    x = jax.random.normal(k_x, (batch, in_features), dtype=jnp.float32)

    # Pure-JAX references (exactly the PyTorch forward semantics).
    w_eps = jnp.outer(params["epsilon_out"], params["epsilon_in"])
    w_noisy = params["weight_mu"] + params["weight_sigma"] * w_eps
    b_noisy = params["bias_mu"] + params["bias_sigma"] * params["bias_epsilon"]
    ref_train = x @ w_noisy.T + b_noisy
    ref_eval = x @ params["weight_mu"].T + params["bias_mu"]

    # 1) Exact f32 path (compute_dtype=None): bit-accurate check.
    out_train_f32 = jax.block_until_ready(
        noisy_linear_apply(params, x, training=True, compute_dtype=None))
    out_eval_f32 = jax.block_until_ready(
        noisy_linear_apply(params, x, training=False, compute_dtype=None))
    np.testing.assert_allclose(np.asarray(out_train_f32), np.asarray(ref_train),
                               rtol=1e-5, atol=1e-5)
    np.testing.assert_allclose(np.asarray(out_eval_f32), np.asarray(ref_eval),
                               rtol=1e-5, atol=1e-5)

    # 2) Default fast path: weights packed once (padded + cast to bf16 in HBM),
    #    bf16 MXU inputs, f32 accumulation.  Looser tolerance (bf16 precision).
    packed = pack_noisy_linear_params(params)
    out_train_bf16 = jax.block_until_ready(
        noisy_linear_apply(packed, x, training=True))
    out_eval_bf16 = jax.block_until_ready(
        noisy_linear_apply(packed, x, training=False))
    np.testing.assert_allclose(np.asarray(out_train_bf16), np.asarray(ref_train),
                               rtol=2e-2, atol=5e-2)
    np.testing.assert_allclose(np.asarray(out_eval_bf16), np.asarray(ref_eval),
                               rtol=2e-2, atol=5e-2)

    print("KERNEL_OK")
</pallas_src>

<mosaic_0001>
module attributes {stable_mosaic.version = 11 : i64} {
  func.func @_noisy_linear_kernel(%arg0: i32, %arg1: i32, %arg2: i32, %arg3: memref<8x128xf32, #tpu.memory_space<vmem>>, %arg4: memref<128x128xf32, #tpu.memory_space<vmem>>, %arg5: memref<128x128xf32, #tpu.memory_space<vmem>>, %arg6: memref<128x1xf32, #tpu.memory_space<vmem>>, %arg7: memref<1x128xf32, #tpu.memory_space<vmem>>, %arg8: memref<3x128xf32, #tpu.memory_space<vmem>>, %arg9: memref<8x128xf32, #tpu.memory_space<vmem>>, %arg10: memref<8x128xf32, #tpu.memory_space<vmem>>) attributes {dimension_semantics = [#tpu.dimension_semantics<arbitrary>, #tpu.dimension_semantics<parallel>, #tpu.dimension_semantics<arbitrary>], iteration_bounds = array<i64: 1, 1, 1>, scalar_prefetch = 0 : i64, scratch_operands = 1 : i64, tpu.core_type = #tpu.core_type<tc>, window_params = [{transform_indices = @transform_0, window_bounds = array<i64: 8, 128>}, {transform_indices = @transform_1, window_bounds = array<i64: 128, 128>}, {transform_indices = @transform_2, window_bounds = array<i64: 128, 128>}, {transform_indices = @transform_3, window_bounds = array<i64: 128, 1>}, {transform_indices = @transform_4, window_bounds = array<i64: 1, 128>}, {transform_indices = @transform_5, window_bounds = array<i64: 3, 128>}, {transform_indices = @transform_6, window_bounds = array<i64: 8, 128>}]} {
    %c0_i32 = arith.constant 0 : i32
    %0 = arith.cmpi eq, %arg2, %c0_i32 : i32
    %1 = arith.extui %0 : i1 to i32
    %c0_i32_0 = arith.constant 0 : i32
    %2 = arith.cmpi ne, %1, %c0_i32_0 : i32
    scf.if %2 {
      %cst_16 = arith.constant 0.000000e+00 : f32
      %20 = vector.broadcast %cst_16 : f32 to vector<8x128xf32>
      %c0_17 = arith.constant 0 : index
      %c0_18 = arith.constant 0 : index
      %21 = vector.load %arg10[%c0_17, %c0_18] : memref<8x128xf32, #tpu.memory_space<vmem>>, vector<8x128xf32>
      tpu.vector_store %arg10[%c0_17, %c0_18], %20 {strides = array<i32>} : memref<8x128xf32, #tpu.memory_space<vmem>>, vector<8x128xf32>,
    } else {
    }
    %c0 = arith.constant 0 : index
    %c0_1 = arith.constant 0 : index
    %3 = vector.load %arg4[%c0, %c0_1] : memref<128x128xf32, #tpu.memory_space<vmem>>, vector<128x128xf32>
    %c0_2 = arith.constant 0 : index
    %c0_3 = arith.constant 0 : index
    %4 = vector.load %arg5[%c0_2, %c0_3] : memref<128x128xf32, #tpu.memory_space<vmem>>, vector<128x128xf32>
    %c0_4 = arith.constant 0 : index
    %c0_5 = arith.constant 0 : index
    %5 = vector.load %arg6[%c0_4, %c0_5] : memref<128x1xf32, #tpu.memory_space<vmem>>, vector<128x1xf32>
    %6 = vector.broadcast %5 : vector<128x1xf32> to vector<128x128xf32>
    %7 = arith.mulf %4, %6 : vector<128x128xf32>
    %c0_6 = arith.constant 0 : index
    %c0_7 = arith.constant 0 : index
    %8 = vector.load %arg7[%c0_6, %c0_7] : memref<1x128xf32, #tpu.memory_space<vmem>>, vector<1x128xf32>
    %9 = vector.broadcast %8 : vector<1x128xf32> to vector<128x128xf32>
    %10 = arith.mulf %7, %9 : vector<128x128xf32>
    %11 = arith.addf %10, %3 : vector<128x128xf32>
    %c0_8 = arith.constant 0 : index
    %c0_9 = arith.constant 0 : index
    %12 = vector.load %arg3[%c0_8, %c0_9] : memref<8x128xf32, #tpu.memory_space<vmem>>, vector<8x128xf32>
    %c0_10 = arith.constant 0 : index
    %c0_11 = arith.constant 0 : index
    %13 = vector.load %arg10[%c0_10, %c0_11] : memref<8x128xf32, #tpu.memory_space<vmem>>, vector<8x128xf32>
    %cst = arith.constant dense<0.000000e+00> : vector<8x128xf32>
    %14 = tpu.matmul %12, %11, %cst {dimension_numbers = #tpu.dot_dimension_numbers<[1], [1], [0], [0], [0, 0, 1, 0], [], []>} : vector<8x128xf32>, vector<128x128xf32>, vector<8x128xf32> -> vector<8x128xf32>
    %15 = arith.addf %13, %14 : vector<8x128xf32>
    %c0_12 = arith.constant 0 : index
    %c0_13 = arith.constant 0 : index
    %16 = vector.load %arg10[%c0_12, %c0_13] : memref<8x128xf32, #tpu.memory_space<vmem>>, vector<8x128xf32>
    tpu.vector_store %arg10[%c0_12, %c0_13], %15 {strides = array<i32>} : memref<8x128xf32, #tpu.memory_space<vmem>>, vector<8x128xf32>,
    %c0_i32_14 = arith.constant 0 : i32
    %17 = arith.cmpi eq, %arg2, %c0_i32_14 : i32
    %18 = arith.extui %17 : i1 to i32
    %c0_i32_15 = arith.constant 0 : i32
    %19 = arith.cmpi ne, %18, %c0_i32_15 : i32
    scf.if %19 {
      %c0_16 = arith.constant 0 : index
      %c0_17 = arith.constant 0 : index
      %20 = vector.load %arg8[%c0_16, %c0_17] : memref<3x128xf32, #tpu.memory_space<vmem>>, vector<3x128xf32>
      %21 = vector.extract_strided_slice %20 {offsets = [0, 0], sizes = [1, 128], strides = [1, 1]} : vector<3x128xf32> to vector<1x128xf32>
      %22 = vector.extract_strided_slice %20 {offsets = [1, 0], sizes = [1, 128], strides = [1, 1]} : vector<3x128xf32> to vector<1x128xf32>
      %23 = vector.extract_strided_slice %20 {offsets = [2, 0], sizes = [1, 128], strides = [1, 1]} : vector<3x128xf32> to vector<1x128xf32>
      %24 = arith.mulf %22, %23 : vector<1x128xf32>
      %25 = arith.addf %21, %24 : vector<1x128xf32>
      %c0_18 = arith.constant 0 : index
      %c0_19 = arith.constant 0 : index
      %26 = vector.load %arg10[%c0_18, %c0_19] : memref<8x128xf32, #tpu.memory_space<vmem>>, vector<8x128xf32>
      %27 = vector.broadcast %25 : vector<1x128xf32> to vector<8x128xf32>
      %28 = arith.addf %26, %27 : vector<8x128xf32>
      %c0_20 = arith.constant 0 : index
      %c0_21 = arith.constant 0 : index
      %29 = vector.load %arg9[%c0_20, %c0_21] : memref<8x128xf32, #tpu.memory_space<vmem>>, vector<8x128xf32>
      tpu.vector_store %arg9[%c0_20, %c0_21], %28 {strides = array<i32>} : memref<8x128xf32, #tpu.memory_space<vmem>>, vector<8x128xf32>,
    } else {
    }
    return
  }
  func.func @transform_0(%arg0: i32, %arg1: i32, %arg2: i32) -> (i32, i32) {
    %c0_i32 = arith.constant 0 : i32
    return %arg0, %arg2 : i32, i32
  }
  func.func @transform_1(%arg0: i32, %arg1: i32, %arg2: i32) -> (i32, i32) {
    %c0_i32 = arith.constant 0 : i32
    return %arg1, %arg2 : i32, i32
  }
  func.func @transform_2(%arg0: i32, %arg1: i32, %arg2: i32) -> (i32, i32) {
    %c0_i32 = arith.constant 0 : i32
    return %arg1, %arg2 : i32, i32
  }
  func.func @transform_3(%arg0: i32, %arg1: i32, %arg2: i32) -> (i32, i32) {
    %c0_i32 = arith.constant 0 : i32
    %c0_i32_0 = arith.constant 0 : i32
    return %arg1, %c0_i32 : i32, i32
  }
  func.func @transform_4(%arg0: i32, %arg1: i32, %arg2: i32) -> (i32, i32) {
    %c0_i32 = arith.constant 0 : i32
    %c0_i32_0 = arith.constant 0 : i32
    return %c0_i32, %arg2 : i32, i32
  }
  func.func @transform_5(%arg0: i32, %arg1: i32, %arg2: i32) -> (i32, i32) {
    %c0_i32 = arith.constant 0 : i32
    %c0_i32_0 = arith.constant 0 : i32
    return %c0_i32, %arg1 : i32, i32
  }
  func.func @transform_6(%arg0: i32, %arg1: i32, %arg2: i32) -> (i32, i32) {
    %c0_i32 = arith.constant 0 : i32
    return %arg0, %arg1 : i32, i32
  }
}

</mosaic_0001>

<bundles_post_ra>
// kernel: tpu_custom_call.1
= control target key start
LH: loop header
LB: loop body
LE: loop exit
PB: predicated region body
PF: predicated region fallthrough
CT: control target
= control target key end

     0   :  { %11 = vsyncpa [#allocation4], 0  ;;  %s665_s0 = inlined_call_operand.hbm [shape: f32[8,128], index: 0, kind: input, shape index: {}]   ;;  %s666_s1 = inlined_call_operand.vmem [shape: f32[128,128], index: 1, kind: input, shape index: {}]   ;;  %s667_s2 = inlined_call_operand.hbm [shape: f32[128,128], index: 2, kind: input, shape index: {}]   ;;  %s668_s3 = inlined_call_operand.vmem [shape: f32[128,1], index: 3, kind: input, shape index: {}]   ;;  %s669_s4 = inlined_call_operand.vmem [shape: f32[1,128], index: 4, kind: input, shape index: {}]   ;;  %s670_s5 = inlined_call_operand.vmem [shape: f32[3,128], index: 5, kind: input, shape index: {}]   ;;  %s671_s6 = inlined_call_operand.hbm [shape: f32[8,128], index: 6, kind: output, shape index: {}]  }
   0x1   :  { %12 = vsyncpa [#allocation7], 0 }
   0x2   :  { %13 = vsyncpa [#allocation5], 0  ;;  %s476_s21 = smov [#allocation3]   ;;  %s477_s23 = smov [#allocation6]  }
   0x3   :  { %s20_s22 = sshll.u32 %s476_s21, 4  ;;  %s31_s24 = sshll.u32 %s477_s23, 4  ;;  %s21_s22 = int_to_ptr.vmem [resolvable:$true] %s20_s22  ;;  %s32_s24 = int_to_ptr.vmem [resolvable:$true] %s31_s24 }
   0x4   :  { %s418_s25 = scalar_lea.vmem %s21_s22, 128  ;;  %p423_p1 = scmp.lt.s32.totalorder %s21_s22, %s21_s22 }
   0x5   :  { %p419_p0 = scmp.ne.s32.totalorder %s21_s22, %s418_s25  ;;  %p424_p2 = scmp.lt.s32.totalorder %s418_s25, %s418_s25 }
   0x7   :  { %p425_p3 = por %p424_p2, %p423_p1 }
   0x9   :  { %p426_p4 = pnand %p425_p3, %p419_p0 }
   0xb   :  { %429 = shalt.err (!%p426_p4)
}
   0xc   :  { %23 = dma.hbm_to_vmem [thread:$0]  %s665_s0, 128, %s21_s22, [#allocation4]  }
   0xd   :  { %s438_s28 = scalar_lea.vmem %s32_s24, 2048  ;;  %p443_p6 = scmp.lt.s32.totalorder %s32_s24, %s32_s24 }
   0xe   :  { %p439_p5 = scmp.ne.s32.totalorder %s32_s24, %s438_s28  ;;  %p444_p7 = scmp.lt.s32.totalorder %s438_s28, %s438_s28 }
  0x10   :  { %p445_p8 = por %p444_p7, %p443_p6 }
  0x12   :  { %p446_p9 = pnand %p445_p8, %p439_p5 }
  0x14   :  { %449 = shalt.err (!%p446_p9)
}
  0x15   :  { %s478_s29 = smov 128   ;;  %s479_s30 = smov 8  }
  0x16   :  { %37 = dma.hbm_to_vmem [thread:$0]  %s667_s2, 2048, %s32_s24, [#allocation7], %s478_s29, %s478_s29, %s479_s30  }
  0x17   :  { %470 = dma.done.wait [#allocation4], 128  }
  0x18   :  { %471 = vsyncadd [#allocation4], 4294967168 }
  0x19   :  { %472 = dma.done.wait [#allocation7], 2048  }
  0x1a   :  { %473 = vsyncadd [#allocation7], 4294965248  ;;  %v480_v0 = vmov 0   ;;  %v102_v1 = vld [vmem:[%s668_s3 + $0x78] sm:$0xff]  ;;  %v100_v2 = vld [vmem:[%s668_s3 + $0x68] sm:$0xff]  ;;  %v481_v5 = vmov 0.0  }
  0x1b   :  { %409 = vset.pattern.permute.xlu1 %v480_v0  ;;  %408 = vset.pattern.permute.xlu0 %v480_v0  ;;  %v101_v3 = vld [vmem:[%s668_s3 + $0x70] sm:$0xff]  ;;  %v99_v4 = vld [vmem:[%s668_s3 + $0x60] sm:$0xff]  ;;  %v98_v6 = vld [vmem:[%s668_s3 + $0x58] sm:$0xff]  ;;  %vm482_vm0 = vmmov 0  }
  0x1c   :  { %180 = vperm.xlu0 %408, %v102_v1   ;;  %170 = vperm.xlu1 %409, %v100_v2   ;;  %v97_v7 = vld [vmem:[%s668_s3 + $0x50] sm:$0xff]  ;;  %v96_v8 = vld [vmem:[%s668_s3 + $0x48] sm:$0xff]  ;;  %v95_v9 = vld [vmem:[%s668_s3 + $0x40] sm:$0xff] }
  0x1d   :  { %365 = vmatprep.subr.mxu0 %v481_v5  ;;  %v94_v10 = vld [vmem:[%s668_s3 + $0x38] sm:$0xff]  ;;  %v93_v11 = vld [vmem:[%s668_s3 + $0x30] sm:$0xff]  ;;  %v92_v12 = vld [vmem:[%s668_s3 + $0x28] sm:$0xff]  ;;  %397 = vmatprep.mubr.msk.f32.mxu0 %vm482_vm0, %v481_v5 }
  0x1e   :  { %v91_v13 = vld [vmem:[%s668_s3 + $0x20] sm:$0xff]  ;;  %v90_v14 = vld [vmem:[%s668_s3 + $0x18] sm:$0xff]  ;;  %v89_v15 = vld [vmem:[%s668_s3 + $0x10] sm:$0xff] }
  0x1f   :  { %v88_v16 = vld [vmem:[%s668_s3 + $0x8] sm:$0xff]  ;;  %v87_v17 = vld [vmem:[%s668_s3] sm:$0xff]  ;;  %v84_v21 = vld [vmem:[#allocation6 + $0x68] sm:$0xff] }
  0x20   :  { %175 = vperm.xlu0 %408, %v101_v3   ;;  %165 = vperm.xlu1 %409, %v99_v4   ;;  %v86_v18 = vld [vmem:[#allocation6 + $0x78] sm:$0xff]  ;;  %v85_v24 = vld [vmem:[#allocation6 + $0x70] sm:$0xff]  ;;  %v83_v31 = vld [vmem:[#allocation6 + $0x60] sm:$0xff] }
  0x21   :  { %v578_v19 = vld [vmem:[%s669_s4] ss:$0 sm:$0xff]  ;;  %v70_v25 = vld [vmem:[%s666_s1 + $0x78] sm:$0xff]  ;;  %v69_v32 = vld [vmem:[%s666_s1 + $0x70] sm:$0xff] }
  0x22   :  { %v68_v36 = vld [vmem:[%s666_s1 + $0x68] sm:$0xff]  ;;  %v82_v40 = vld [vmem:[#allocation6 + $0x58] sm:$0xff]  ;;  %v81_v45 = vld [vmem:[#allocation6 + $0x50] sm:$0xff] }
  0x23   :  { %v67_v46 = vld [vmem:[%s666_s1 + $0x60] sm:$0xff]  ;;  %v80_v51 = vld [vmem:[#allocation6 + $0x48] sm:$0xff]  ;;  %v66_v52 = vld [vmem:[%s666_s1 + $0x58] sm:$0xff] }
  0x24   :  { %160 = vperm.xlu0 %408, %v98_v6   ;;  %155 = vperm.xlu1 %409, %v97_v7   ;;  %v79_v57 = vld [vmem:[#allocation6 + $0x40] sm:$0xff]  ;;  %v65_v58 = vld [vmem:[%s666_s1 + $0x50] sm:$0xff]  ;;  %v78_v63 = vld [vmem:[#allocation6 + $0x38] sm:$0xff] }
  0x25   :  { %v64_v0 = vld [vmem:[%s666_s1 + $0x48] sm:$0xff]  ;;  %v77_v6 = vld [vmem:[#allocation6 + $0x30] sm:$0xff]  ;;  %v63_v7 = vld [vmem:[%s666_s1 + $0x40] sm:$0xff] }
  0x28   :  { %150 = vperm.xlu0 %408, %v96_v8   ;;  %145 = vperm.xlu1 %409, %v95_v9  }
  0x2c   :  { %140 = vperm.xlu0 %408, %v94_v10   ;;  %135 = vperm.xlu1 %409, %v93_v11  }
  0x30   :  { %130 = vperm.xlu0 %408, %v92_v12   ;;  %125 = vperm.xlu1 %409, %v91_v13   ;;  %v76_v12 = vld [vmem:[#allocation6 + $0x28] sm:$0xff]  ;;  %v62_v13 = vld [vmem:[%s666_s1 + $0x38] sm:$0xff] }
  0x34   :  { %120 = vperm.xlu0 %408, %v90_v14   ;;  %115 = vperm.xlu1 %409, %v89_v15  }
  0x38   :  { %110 = vperm.xlu0 %408, %v88_v16   ;;  %105 = vperm.xlu1 %409, %v87_v17  }
  0x97   :  { %v181_v20 = vpop.permute.xlu0 %180  ;;  %v171_v23 = vpop.permute.xlu1 %170 }
  0x98   :  { %v198_v22 = vmul.f32 %v181_v20, %v86_v18  ;;  %v196_v27 = vmul.f32 %v171_v23, %v84_v21  ;;  %v75_v18 = vld [vmem:[#allocation6 + $0x20] sm:$0xff]  ;;  %v61_v20 = vld [vmem:[%s666_s1 + $0x30] sm:$0xff] }
  0x9a   :  { %v221_v26 = vmul.f32 %v578_v19, %v198_v22  ;;  %v219_v33 = vmul.f32 %v578_v19, %v196_v27 }
  0x9b   :  { %v176_v28 = vpop.permute.xlu0 %175  ;;  %v166_v35 = vpop.permute.xlu1 %165 }
  0x9c   :  { %v197_v29 = vmul.f32 %v176_v28, %v85_v24  ;;  %v237_v30 = vadd.f32 %v221_v26, %v70_v25  ;;  %v195_v37 = vmul.f32 %v166_v35, %v83_v31  ;;  %v235_v41 = vadd.f32 %v219_v33, %v68_v36  ;;  %v74_v25 = vld [vmem:[#allocation6 + $0x18] sm:$0xff]  ;;  %v60_v26 = vld [vmem:[%s666_s1 + $0x28] sm:$0xff]  ;;  %v73_v31 = vld [vmem:[#allocation6 + $0x10] sm:$0xff] }
  0x9e   :  { %v220_v34 = vmul.f32 %v578_v19, %v197_v29  ;;  %366 = vmatpush3.xpose.msra.mxu0 %v237_v30  ;;  %v218_v42 = vmul.f32 %v578_v19, %v195_v37  ;;  %v72_v37 = vld [vmem:[#allocation6 + $0x8] sm:$0xff] }
  0x9f   :  { %367 = vmatprep.subr.mxu0 %v481_v5  ;;  %v161_v39 = vpop.permute.xlu0 %160  ;;  %v156_v44 = vpop.permute.xlu1 %155 }
  0xa0   :  { %v236_v38 = vadd.f32 %v220_v34, %v69_v32  ;;  %v194_v43 = vmul.f32 %v161_v39, %v82_v40  ;;  %v193_v48 = vmul.f32 %v156_v44, %v81_v45  ;;  %v234_v49 = vadd.f32 %v218_v42, %v67_v46  ;;  %v59_v32 = vld [vmem:[%s666_s1 + $0x20] sm:$0xff]  ;;  %v57_v44 = vld [vmem:[%s666_s1 + $0x10] sm:$0xff] }
  0xa2   :  { %368 = vmatpush3.xpose.msra.mxu0 %v236_v38  ;;  %v217_v47 = vmul.f32 %v578_v19, %v194_v43  ;;  %v216_v53 = vmul.f32 %v578_v19, %v193_v48  ;;  %v58_v38 = vld [vmem:[%s666_s1 + $0x18] sm:$0xff]  ;;  %v71_v43 = vld [vmem:[#allocation6] sm:$0xff] }
  0xa3   :  { %369 = vmatprep.subr.mxu0 %v481_v5  ;;  %v151_v50 = vpop.permute.xlu0 %150  ;;  %v146_v56 = vpop.permute.xlu1 %145  ;;  %v56_v48 = vld [vmem:[%s666_s1 + $0x8] sm:$0xff] }
  0xa4   :  { %v192_v54 = vmul.f32 %v151_v50, %v80_v51  ;;  %v233_v55 = vadd.f32 %v217_v47, %v66_v52  ;;  %v191_v60 = vmul.f32 %v146_v56, %v79_v57  ;;  %v232_v61 = vadd.f32 %v216_v53, %v65_v58  ;;  %v55_v51 = vld [vmem:[%s666_s1] sm:$0xff]  ;;  %s483_s1 = smov [#allocation8]  }
  0xa5   :  { %v238_v53 = vld [vmem:[#allocation3] sm:$0xff]  ;;  %v325_v57 = vlaneseq  ;;  %s337_s19 = sshll.u32 %s483_s1, 4  ;;  %s338_s19 = int_to_ptr.vmem [resolvable:$true] %s337_s19 }
  0xa6   :  { %370 = vmatpush3.xpose.msra.mxu0 %v235_v41  ;;  %v215_v59 = vmul.f32 %v578_v19, %v192_v54  ;;  %v214_v1 = vmul.f32 %v578_v19, %v191_v60  ;;  %v315_v54 = vld [vmem:[%s670_s5] sm:$0x7]  ;;  %s450_s20 = scalar_lea.vmem %s338_s19, 128  ;;  %p455_p11 = scmp.lt.s32.totalorder %s338_s19, %s338_s19 }
  0xa7   :  { %371 = vmatprep.subr.mxu0 %v481_v5  ;;  %v141_v62 = vpop.permute.xlu0 %140  ;;  %v136_v4 = vpop.permute.xlu1 %135  ;;  %v326_v58 = vshrl.u32 %v325_v57, 7  ;;  %p451_p10 = scmp.ne.s32.totalorder %s338_s19, %s450_s20  ;;  %p456_p12 = scmp.lt.s32.totalorder %s450_s20, %s450_s20 }
  0xa8   :  { %v190_v2 = vmul.f32 %v141_v62, %v78_v63  ;;  %v231_v3 = vadd.f32 %v215_v59, %v64_v0  ;;  %v189_v9 = vmul.f32 %v136_v4, %v77_v6  ;;  %v230_v10 = vadd.f32 %v214_v1, %v63_v7 }
  0xa9   :  { %v327_v60 = vsub.s32 0, %v326_v58  ;;  %p457_p13 = por %p456_p12, %p455_p11 }
  0xaa   :  { %372 = vmatpush3.xpose.msra.mxu0 %v234_v49  ;;  %v213_v8 = vmul.f32 %v578_v19, %v190_v2  ;;  %v212_v14 = vmul.f32 %v578_v19, %v189_v9 }
  0xab   :  { %373 = vmatprep.subr.mxu0 %v481_v5  ;;  %v131_v11 = vpop.permute.xlu0 %130  ;;  %v126_v17 = vpop.permute.xlu1 %125  ;;  %p458_p0 = pnand %p457_p13, %p451_p10 }
  0xac   :  { %v188_v15 = vmul.f32 %v131_v11, %v76_v12  ;;  %v229_v16 = vadd.f32 %v213_v8, %v62_v13  ;;  %v187_v22 = vmul.f32 %v126_v17, %v75_v18  ;;  %v228_v23 = vadd.f32 %v212_v14, %v61_v20 }
  0xae   :  { %374 = vmatpush3.xpose.msra.mxu0 %v233_v55  ;;  %v211_v21 = vmul.f32 %v578_v19, %v188_v15  ;;  %v210_v27 = vmul.f32 %v578_v19, %v187_v22  ;;  %v317_v55 = vrot.slane %v315_v54, 1 }
  0xaf   :  { %375 = vmatprep.subr.mxu0 %v481_v5  ;;  %v121_v24 = vpop.permute.xlu0 %120  ;;  %v116_v30 = vpop.permute.xlu1 %115 }
  0xb0   :  { %v186_v28 = vmul.f32 %v121_v24, %v74_v25  ;;  %v227_v29 = vadd.f32 %v211_v21, %v60_v26  ;;  %v185_v34 = vmul.f32 %v116_v30, %v73_v31  ;;  %v226_v35 = vadd.f32 %v210_v27, %v59_v32 }
  0xb1   :  { %v319_v56 = vmul.f32 %v317_v55, %v315_v54 }
  0xb2   :  { %376 = vmatpush3.xpose.msra.mxu0 %v232_v61  ;;  %v209_v33 = vmul.f32 %v578_v19, %v186_v28  ;;  %v208_v39 = vmul.f32 %v578_v19, %v185_v34 }
  0xb3   :  { %377 = vmatprep.subr.mxu0 %v481_v5  ;;  %v111_v36 = vpop.permute.xlu0 %110  ;;  %v106_v42 = vpop.permute.xlu1 %105 }
  0xb4   :  { %v184_v40 = vmul.f32 %v111_v36, %v72_v37  ;;  %v225_v41 = vadd.f32 %v209_v33, %v58_v38  ;;  %v183_v46 = vmul.f32 %v106_v42, %v71_v43  ;;  %v224_v47 = vadd.f32 %v208_v39, %v57_v44 }
  0xb6   :  { %378 = vmatpush3.xpose.msra.mxu0 %v231_v3  ;;  %v207_v45 = vmul.f32 %v578_v19, %v184_v40  ;;  %v206_v49 = vmul.f32 %v578_v19, %v183_v46  ;;  %v321_v19 = vrot.slane %v319_v56, 1 }
  0xb7   :  { %379 = vmatprep.subr.mxu0 %v481_v5 }
  0xb8   :  { %v223_v50 = vadd.f32 %v207_v45, %v56_v48  ;;  %v222_v52 = vadd.f32 %v206_v49, %v55_v51  ;;  %v323_v59 = vadd.f32 %v321_v19, %v315_v54 }
  0xba   :  { %380 = vmatpush3.xpose.msra.mxu0 %v230_v10  ;;  %v328_v61 = vrot.slane %v323_v59, %v327_v60 }
  0xbb   :  { %381 = vmatprep.subr.mxu0 %v481_v5 }
  0xbe   :  { %382 = vmatpush3.xpose.msra.mxu0 %v229_v16 }
  0xbf   :  { %383 = vmatprep.subr.mxu0 %v481_v5 }
  0xc2   :  { %384 = vmatpush3.xpose.msra.mxu0 %v228_v23 }
  0xc3   :  { %385 = vmatprep.subr.mxu0 %v481_v5 }
  0xc6   :  { %386 = vmatpush3.xpose.msra.mxu0 %v227_v29 }
  0xc7   :  { %387 = vmatprep.subr.mxu0 %v481_v5 }
  0xca   :  { %388 = vmatpush3.xpose.msra.mxu0 %v226_v35 }
  0xcb   :  { %389 = vmatprep.subr.mxu0 %v481_v5 }
  0xce   :  { %390 = vmatpush3.xpose.msra.mxu0 %v225_v41 }
  0xcf   :  { %391 = vmatprep.subr.mxu0 %v481_v5 }
  0xd2   :  { %392 = vmatpush3.xpose.msra.mxu0 %v224_v47 }
  0xd3   :  { %393 = vmatprep.subr.mxu0 %v481_v5 }
  0xd6   :  { %394 = vmatpush3.xpose.msra.mxu0 %v223_v50 }
  0xd7   :  { %395 = vmatprep.subr.mxu0 %v481_v5 }
  0xda   :  { %396 = vmatpush3.xpose.msra.mxu0 %v222_v52 }
  0xdd   :  { %398 = vmatmul.mubr.f32.vlgmr.msra.gmra.mxu0 %v238_v53 }
 0x19d   :  { %v306_v62 = vpop.f32.mrf.mxu0 }
 0x19e   :  { %v329_v5 = vadd.f32 %v328_v61, %v306_v62 }
 0x19f   :  { %v399_v63 = vpop.f32.mrf.mxu0 }
 0x1a0   :  { %330 = vst [vmem:[#allocation8] sm:$0xff] %v329_v5 }
 0x1a1   :  { %461 = shalt.err (!%p458_p0)
}
 0x1a2   :  { %340 = dma.vmem_to_hbm [thread:$0]  %s338_s19, 128, %s671_s6, [#allocation5]  }
 0x1a3   :  { %474 = dma.done.wait [#allocation5], 128  }
 0x1a4   :  { %475 = vsyncadd [#allocation5], 4294967168 }
 0x1a5   :  { %344 = vsyncpa [#allocation4], 1 }
 0x1a6   :  { %345 = vsyncpa [#allocation7], 1 }
 0x1a7   :  { %346 = vsyncpa [#allocation5], 1 }

</bundles_post_ra>
